<compile_context>
chip_gen: v5e
topology: v5e:2x2
jax: 0.10.0
libtpu: 0.0.40
codegen_flags: <defaults>
</compile_context>

<pallas_src>
import math
import functools

import jax
import jax.numpy as jnp
from jax.experimental import pallas as pl
from jax.experimental.pallas import tpu as pltpu


# --------------------------------------------------------------------------- #
# Kernel
# --------------------------------------------------------------------------- #
def _encoder_layer_kernel(
    src_ref, pos_ref,
    wqk_ref, bqk_ref,        # (E, 2E) pre-transposed (q part pre-scaled), (1, 2E)
    wv_ref, bv_ref,          # (E, E) pre-transposed, (1, E)
    wpost_ref, bpost_ref,    # (E, E) fused (wl@wo)^T, (1, E)
    gamma_ref, beta_ref,     # (1, E)
    out_ref,                 # (BT, L, E)
    *, nhead: int, eps: float, bt: int, seq_len: int,
    approx_recip: bool, bf16_exp: bool,
):
    E = out_ref.shape[-1]
    hd = E // nhead
    M = bt * seq_len
    cdt = wqk_ref.dtype                       # matmul compute dtype (bf16 or f32)

    x = src_ref[...]                          # (BT, L, E) f32
    qk_in = x + pos_ref[...]                  # pos block may be (1, L, E) (broadcast)

    x_flat = x.reshape(M, E)
    qk_flat = qk_in.reshape(M, E)

    # Fused Q/K projection (one (M,E)x(E,2E) matmul) + V projection.
    qk = jnp.dot(qk_flat.astype(cdt), wqk_ref[...],
                 preferred_element_type=jnp.float32) + bqk_ref[...]
    v = jnp.dot(x_flat.astype(cdt), wv_ref[...],
                preferred_element_type=jnp.float32) + bv_ref[...]

    # Single cast of q/k/v to the compute dtype (per-head slices reuse these).
    q_c = qk[:, :E].reshape(bt, seq_len, E).astype(cdt)   # pre-scaled by 1/sqrt(hd)
    k_c = qk[:, E:].reshape(bt, seq_len, E).astype(cdt)
    v_c = v.reshape(bt, seq_len, E).astype(cdt)

    # Attention with post-projection fused into the head loop: each head adds a
    # lane-dense (M, hd) @ (hd, E) matmul into an f32 (M, E) accumulator.
    # No VMEM scratch, no sub-128-lane masked stores.
    src2 = jnp.zeros((M, E), jnp.float32)
    for h in range(nhead):
        lo = h * hd
        qh = q_c[:, :, lo:lo + hd]            # (BT, L, hd)
        kh = k_c[:, :, lo:lo + hd]
        vh = v_c[:, :, lo:lo + hd]
        s = jnp.einsum('bqd,bkd->bqk', qh, kh,
                       preferred_element_type=jnp.float32)       # (BT, L, L)
        s = s - jnp.max(s, axis=-1, keepdims=True)
        if bf16_exp:                          # optional EUP-in-bf16 (v6e/v7x)
            e = jnp.exp(s.astype(jnp.bfloat16)).astype(jnp.float32)
        else:
            e = jnp.exp(s)
        inv = pl.reciprocal(jnp.sum(e, axis=-1, keepdims=True),
                            approx=approx_recip)
        p = (e * inv).astype(cdt)
        oh = jnp.einsum('bqk,bkd->bqd', p, vh,
                        preferred_element_type=jnp.float32)      # (BT, L, hd)
        src2 = src2 + jnp.dot(oh.reshape(M, hd).astype(cdt),
                              wpost_ref[lo:lo + hd, :],
                              preferred_element_type=jnp.float32)
    src2 = src2 + bpost_ref[...]

    # Residual + LayerNorm (f32).
    res = x_flat + src2
    mean = jnp.mean(res, axis=-1, keepdims=True)
    var = jnp.mean(jnp.square(res - mean), axis=-1, keepdims=True)
    normed = (res - mean) * jax.lax.rsqrt(var + eps)
    y = normed * gamma_ref[...] + beta_ref[...]
    out_ref[...] = y.reshape(bt, seq_len, E).astype(out_ref.dtype)


# --------------------------------------------------------------------------- #
# Generation-aware tiling / VMEM budget
# --------------------------------------------------------------------------- #
def _tpu_vmem_capacity_bytes(default=64 * 1024 * 1024):
    try:
        return int(pltpu.get_tpu_info().vmem_capacity_bytes)
    except Exception:
        return default    # conservative (v7x-sized) fallback


def _derive_tiling(n, seq_len, e, cdt_bytes, pos_broadcast, b_tile):
    cap = _tpu_vmem_capacity_bytes()
    vmem_limit = max(32 << 20, min(cap * 3 // 4, cap - (16 << 20)))
    big_vmem = cap >= (100 << 20)        # v5e / v6e: 128 MiB VMEM, single TensorCore
    target_rows = 1024 if big_vmem else 512
    prefer_even_grid = not big_vmem      # v7x: 64 MiB, 2 TCs share the "parallel" grid

    def footprint(bt):
        m = bt * seq_len
        act = bt * seq_len * e * 4
        pos_t = seq_len * e * 4 if pos_broadcast else act
        io = 2 * act + 2 * pos_t + 2 * act                 # dbl-buffered src/pos/out
        weights = 4 * e * e * cdt_bytes + 8 * e * 4        # single-buffered consts
        live = m * e * (5 * 4 + 3 * cdt_bytes) + 4 * bt * seq_len * seq_len * 4
        return int(1.2 * (io + weights + live))

    if b_tile is None:
        divs = [d for d in range(1, n + 1) if n % d == 0]
        fits = [d for d in divs
                if d * seq_len <= max(target_rows, seq_len)
                and footprint(d) <= int(0.85 * vmem_limit)]
        bt = max(fits) if fits else 1
        if prefer_even_grid and (n // bt) % 2 != 0:
            # Keep both TensorCores busy without shrinking the tile below half.
            for d in sorted(fits, reverse=True):
                if (n // d) % 2 == 0 and 2 * d >= bt:
                    bt = d
                    break
    else:
        bt = b_tile
    assert n % bt == 0, f"b_tile={bt} must divide batch={n}"
    return bt, int(vmem_limit)


# --------------------------------------------------------------------------- #
# Wrapper
# --------------------------------------------------------------------------- #
def encoder_layer_thin(src, pos, params, *, nhead, eps=1e-5,
                       compute_dtype=jnp.bfloat16, out_dtype=None,
                       b_tile=None, pos_broadcast=False,
                       approx_softmax_recip=None, bf16_softmax_exp=False,
                       single_buffer_weights=True):
    """TransformerEncoderLayerThin.forward_post (eval mode).

    src, pos: (L, N, E) seq-first (nn.MultiheadAttention layout). Returns (L, N, E).
    Notes:
      * approx_softmax_recip (default: True iff compute_dtype is bf16) uses the EUP
        approximate reciprocal -> softmax rows do not sum to exactly 1.
      * wo/wl fusion is valid because dropout is identity (eval mode).
      * attn_mask / key_padding_mask are not implemented (None in the target call).
      * pos_broadcast=True requires pos identical across the batch dimension.
    """
    L, N, E = src.shape
    assert E % nhead == 0, "d_model must be divisible by nhead"
    hd = E // nhead
    scale = 1.0 / math.sqrt(hd)

    cdtype = jnp.dtype(compute_dtype)
    if approx_softmax_recip is None:
        approx_softmax_recip = (cdtype == jnp.dtype(jnp.bfloat16))
    if out_dtype is None:
        out_dtype = src.dtype

    if pos_broadcast:
        # Guard the broadcast assumption when data is concrete.
        try:
            assert bool(jnp.all(pos == pos[:, :1, :])), \
                "pos_broadcast=True but pos differs across the batch dimension"
        except jax.errors.ConcretizationTypeError:
            pass  # under tracing: caller guarantees the broadcast property

    wq, wk, wv = params["wq"], params["wk"], params["wv"]
    bq, bk, bv = params["bq"], params["bk"], params["bv"]
    wo, bo = params["wo"], params["bo"]
    wl, bl = params["wl"], params["bl"]

    # Host-side (grid-invariant) weight prep: pre-transpose, fuse, fold scale.
    wqk_t = jnp.concatenate([(wq * scale).T, wk.T], axis=1).astype(cdtype)   # (E, 2E)
    bqk = jnp.concatenate([bq * scale, bk], axis=1).astype(jnp.float32)      # (1, 2E)
    wv_t = wv.T.astype(cdtype)                                               # (E, E)
    bv_f = bv.astype(jnp.float32)
    wpost_t = (wo.T @ wl.T).astype(cdtype)                                   # (E, E)
    bpost = (bo @ wl.T + bl).astype(jnp.float32)                             # (1, E)
    gamma = params["gamma"].astype(jnp.float32)
    beta = params["beta"].astype(jnp.float32)

    bt, vmem_limit = _derive_tiling(N, L, E, cdtype.itemsize, pos_broadcast, b_tile)

    # TODO(synk): the (L,N,E)<->(N,L,E) transposes are extra HBM passes; an in-kernel
    # batch-major reorder needs a (1,0,2) transpose / non-leading-batch dot_general that
    # Mosaic does not lower reliably, so fold the layout change into this layer's
    # producer/consumer when integrating into a full model.
    src_b = jnp.transpose(src, (1, 0, 2)).astype(jnp.float32)    # (N, L, E)

    batch_spec = pl.BlockSpec((bt, L, E), lambda b: (b, 0, 0))

    def _const(shape):
        kwargs = {}
        if single_buffer_weights:
            # Constant block index -> double-buffering only wastes VMEM.
            kwargs["pipeline_mode"] = pl.Buffered(1)
        return pl.BlockSpec(shape, lambda b: (0,) * len(shape), **kwargs)

    if pos_broadcast:
        pos_b = jnp.transpose(pos[:, :1, :], (1, 0, 2)).astype(jnp.float32)  # (1, L, E)
        pos_spec = _const((1, L, E))
    else:
        pos_b = jnp.transpose(pos, (1, 0, 2)).astype(jnp.float32)            # (N, L, E)
        pos_spec = batch_spec

    out_b = pl.pallas_call(
        functools.partial(_encoder_layer_kernel, nhead=nhead, eps=eps, bt=bt,
                          seq_len=L, approx_recip=approx_softmax_recip,
                          bf16_exp=bf16_softmax_exp),
        out_shape=jax.ShapeDtypeStruct((N, L, E), out_dtype),
        grid_spec=pltpu.PrefetchScalarGridSpec(
            num_scalar_prefetch=0,
            grid=(N // bt,),
            in_specs=[
                batch_spec, pos_spec,                     # src, pos
                _const((E, 2 * E)), _const((1, 2 * E)),   # wqk_t, bqk
                _const((E, E)), _const((1, E)),           # wv_t, bv
                _const((E, E)), _const((1, E)),           # wpost_t, bpost
                _const((1, E)), _const((1, E)),           # gamma, beta
            ],
            out_specs=batch_spec,
        ),
        compiler_params=pltpu.CompilerParams(
            dimension_semantics=("parallel",),
            vmem_limit_bytes=vmem_limit,
        ),
    )(src_b, pos_b, wqk_t, bqk, wv_t, bv_f, wpost_t, bpost, gamma, beta)

    return jnp.transpose(out_b, (1, 0, 2))   # back to (L, N, E)


# --------------------------------------------------------------------------- #
# Pure-JAX reference (mirrors PyTorch forward_post, eval mode)
# --------------------------------------------------------------------------- #
def reference(src, pos, params, *, nhead, eps=1e-5):
    L, N, E = src.shape
    hd = E // nhead
    qk_in = src + pos
    q = jnp.einsum("lne,fe->lnf", qk_in, params["wq"]) + params["bq"][0]
    k = jnp.einsum("lne,fe->lnf", qk_in, params["wk"]) + params["bk"][0]
    v = jnp.einsum("lne,fe->lnf", src, params["wv"]) + params["bv"][0]

    def split(x):  # (L, N, E) -> (N, H, L, hd)
        return jnp.transpose(x.reshape(L, N, nhead, hd), (1, 2, 0, 3))

    qh, kh, vh = split(q), split(k), split(v)
    scores = jnp.einsum("nhqd,nhkd->nhqk", qh, kh) / math.sqrt(hd)
    attn = jax.nn.softmax(scores, axis=-1)
    out = jnp.einsum("nhqk,nhkd->nhqd", attn, vh)
    out = jnp.transpose(out, (2, 0, 1, 3)).reshape(L, N, E)
    out = jnp.einsum("lne,fe->lnf", out, params["wo"]) + params["bo"][0]
    src2 = jnp.einsum("lne,fe->lnf", out, params["wl"]) + params["bl"][0]
    res = src + src2
    mean = jnp.mean(res, axis=-1, keepdims=True)
    var = jnp.mean(jnp.square(res - mean), axis=-1, keepdims=True)
    normed = (res - mean) / jnp.sqrt(var + eps)
    return normed * params["gamma"][0] + params["beta"][0]


if __name__ == "__main__":
    # NOTE: demo shapes are tiny (E=32, hd=8). Real configs should pad E / hd to
    # multiples of 128 lanes before benchmarking (sub-128 last dims run masked).
    L, N, E, H = 8, 2, 32, 4     # seq, batch, d_model, nhead

    key = jax.random.PRNGKey(0)
    ks = jax.random.split(key, 12)
    s = 0.1
    params = {
        "wq": s * jax.random.normal(ks[0], (E, E), jnp.float32),
        "wk": s * jax.random.normal(ks[1], (E, E), jnp.float32),
        "wv": s * jax.random.normal(ks[2], (E, E), jnp.float32),
        "bq": s * jax.random.normal(ks[3], (1, E), jnp.float32),
        "bk": s * jax.random.normal(ks[4], (1, E), jnp.float32),
        "bv": s * jax.random.normal(ks[5], (1, E), jnp.float32),
        "wo": s * jax.random.normal(ks[6], (E, E), jnp.float32),
        "bo": s * jax.random.normal(ks[7], (1, E), jnp.float32),
        "wl": s * jax.random.normal(ks[8], (E, E), jnp.float32),
        "bl": s * jax.random.normal(ks[9], (1, E), jnp.float32),
        "gamma": jnp.ones((1, E), jnp.float32),
        "beta": jnp.zeros((1, E), jnp.float32),
    }

    src = jax.random.normal(ks[10], (L, N, E), jnp.float32)
    pos = jax.random.normal(ks[11], (L, N, E), jnp.float32)

    ref = reference(src, pos, params, nhead=H)

    # 1) Exactness path: f32 matmul operands, auto-derived batch tile / VMEM limit.
    out_f32 = jax.block_until_ready(
        encoder_layer_thin(src, pos, params, nhead=H, compute_dtype=jnp.float32))
    assert out_f32.shape == (L, N, E)
    err_f32 = float(jnp.max(jnp.abs(out_f32 - ref)))
    assert err_f32 < 5e-4, f"f32 kernel does not match reference: {err_f32}"

    # 2) Fast path: bf16 operands, f32 accumulation; b_tile=1 exercises a 2-step grid.
    out_bf16 = jax.block_until_ready(
        encoder_layer_thin(src, pos, params, nhead=H,
                           compute_dtype=jnp.bfloat16, b_tile=1))
    err_bf16 = float(jnp.max(jnp.abs(out_bf16 - ref)))
    assert err_bf16 < 5e-2, f"bf16 kernel does not match reference: {err_bf16}"

    # 3) Batch-broadcast positional-embedding path (pos as a single (1,L,E) block).
    pos_bc = jnp.broadcast_to(pos[:, :1, :], (L, N, E))
    ref_bc = reference(src, pos_bc, params, nhead=H)
    out_bc = jax.block_until_ready(
        encoder_layer_thin(src, pos_bc, params, nhead=H,
                           compute_dtype=jnp.float32, pos_broadcast=True))
    err_bc = float(jnp.max(jnp.abs(out_bc - ref_bc)))
    assert err_bc < 5e-4, f"broadcast-pos kernel does not match reference: {err_bc}"

    print("KERNEL_OK")
</pallas_src>

<mosaic_0001>
module attributes {stable_mosaic.version = 11 : i64} {
  func.func @_encoder_layer_kernel(%arg0: i32, %arg1: memref<1x8x32xf32, #tpu.memory_space<vmem>>, %arg2: memref<1x8x32xf32, #tpu.memory_space<vmem>>, %arg3: memref<32x64xf32, #tpu.memory_space<vmem>>, %arg4: memref<1x64xf32, #tpu.memory_space<vmem>>, %arg5: memref<32x32xf32, #tpu.memory_space<vmem>>, %arg6: memref<1x32xf32, #tpu.memory_space<vmem>>, %arg7: memref<32x32xf32, #tpu.memory_space<vmem>>, %arg8: memref<1x32xf32, #tpu.memory_space<vmem>>, %arg9: memref<1x32xf32, #tpu.memory_space<vmem>>, %arg10: memref<1x32xf32, #tpu.memory_space<vmem>>, %arg11: memref<1x8x32xf32, #tpu.memory_space<vmem>>) attributes {dimension_semantics = [#tpu.dimension_semantics<parallel>], iteration_bounds = array<i64: 2>, scalar_prefetch = 0 : i64, scratch_operands = 0 : i64, tpu.core_type = #tpu.core_type<tc>, window_params = [{transform_indices = @transform_0, window_bounds = array<i64: 1, 8, 32>}, {transform_indices = @transform_1, window_bounds = array<i64: 1, 8, 32>}, {pipeline_mode = #tpu.pipeline_mode<synchronous>, transform_indices = @transform_2, window_bounds = array<i64: 32, 64>}, {pipeline_mode = #tpu.pipeline_mode<synchronous>, transform_indices = @transform_3, window_bounds = array<i64: 1, 64>}, {pipeline_mode = #tpu.pipeline_mode<synchronous>, transform_indices = @transform_4, window_bounds = array<i64: 32, 32>}, {pipeline_mode = #tpu.pipeline_mode<synchronous>, transform_indices = @transform_5, window_bounds = array<i64: 1, 32>}, {pipeline_mode = #tpu.pipeline_mode<synchronous>, transform_indices = @transform_6, window_bounds = array<i64: 32, 32>}, {pipeline_mode = #tpu.pipeline_mode<synchronous>, transform_indices = @transform_7, window_bounds = array<i64: 1, 32>}, {pipeline_mode = #tpu.pipeline_mode<synchronous>, transform_indices = @transform_8, window_bounds = array<i64: 1, 32>}, {pipeline_mode = #tpu.pipeline_mode<synchronous>, transform_indices = @transform_9, window_bounds = array<i64: 1, 32>}, {transform_indices = @transform_10, window_bounds = array<i64: 1, 8, 32>}]} {
    %c0 = arith.constant 0 : index
    %c0_0 = arith.constant 0 : index
    %c0_1 = arith.constant 0 : index
    %0 = vector.load %arg1[%c0, %c0_0, %c0_1] : memref<1x8x32xf32, #tpu.memory_space<vmem>>, vector<1x8x32xf32>
    %c0_2 = arith.constant 0 : index
    %c0_3 = arith.constant 0 : index
    %c0_4 = arith.constant 0 : index
    %1 = vector.load %arg2[%c0_2, %c0_3, %c0_4] : memref<1x8x32xf32, #tpu.memory_space<vmem>>, vector<1x8x32xf32>
    %2 = arith.addf %0, %1 : vector<1x8x32xf32>
    %3 = vector.shape_cast %0 : vector<1x8x32xf32> to vector<8x32xf32>
    %4 = vector.shape_cast %2 : vector<1x8x32xf32> to vector<8x32xf32>
    %c0_5 = arith.constant 0 : index
    %c0_6 = arith.constant 0 : index
    %5 = vector.load %arg3[%c0_5, %c0_6] : memref<32x64xf32, #tpu.memory_space<vmem>>, vector<32x64xf32>
    %cst = arith.constant dense<0.000000e+00> : vector<8x64xf32>
    %6 = tpu.matmul %4, %5, %cst {dimension_numbers = #tpu.dot_dimension_numbers<[1], [0], [0], [1], [0, 0, 1, 1], [], []>} : vector<8x32xf32>, vector<32x64xf32>, vector<8x64xf32> -> vector<8x64xf32>
    %c0_7 = arith.constant 0 : index
    %c0_8 = arith.constant 0 : index
    %7 = vector.load %arg4[%c0_7, %c0_8] : memref<1x64xf32, #tpu.memory_space<vmem>>, vector<1x64xf32>
    %8 = vector.broadcast %7 : vector<1x64xf32> to vector<8x64xf32>
    %9 = arith.addf %6, %8 : vector<8x64xf32>
    %c0_9 = arith.constant 0 : index
    %c0_10 = arith.constant 0 : index
    %10 = vector.load %arg5[%c0_9, %c0_10] : memref<32x32xf32, #tpu.memory_space<vmem>>, vector<32x32xf32>
    %cst_11 = arith.constant dense<0.000000e+00> : vector<8x32xf32>
    %11 = tpu.matmul %3, %10, %cst_11 {dimension_numbers = #tpu.dot_dimension_numbers<[1], [0], [0], [1], [0, 0, 1, 1], [], []>} : vector<8x32xf32>, vector<32x32xf32>, vector<8x32xf32> -> vector<8x32xf32>
    %c0_12 = arith.constant 0 : index
    %c0_13 = arith.constant 0 : index
    %12 = vector.load %arg6[%c0_12, %c0_13] : memref<1x32xf32, #tpu.memory_space<vmem>>, vector<1x32xf32>
    %13 = vector.broadcast %12 : vector<1x32xf32> to vector<8x32xf32>
    %14 = arith.addf %11, %13 : vector<8x32xf32>
    %15 = vector.extract_strided_slice %9 {offsets = [0, 0], sizes = [8, 32], strides = [1, 1]} : vector<8x64xf32> to vector<8x32xf32>
    %16 = vector.shape_cast %15 : vector<8x32xf32> to vector<1x8x32xf32>
    %17 = vector.extract_strided_slice %9 {offsets = [0, 32], sizes = [8, 32], strides = [1, 1]} : vector<8x64xf32> to vector<8x32xf32>
    %18 = vector.shape_cast %17 : vector<8x32xf32> to vector<1x8x32xf32>
    %19 = vector.shape_cast %14 : vector<8x32xf32> to vector<1x8x32xf32>
    %cst_14 = arith.constant 0.000000e+00 : f32
    %20 = vector.broadcast %cst_14 : f32 to vector<8x32xf32>
    %21 = vector.extract_strided_slice %16 {offsets = [0, 0, 0], sizes = [1, 8, 8], strides = [1, 1, 1]} : vector<1x8x32xf32> to vector<1x8x8xf32>
    %22 = vector.extract_strided_slice %18 {offsets = [0, 0, 0], sizes = [1, 8, 8], strides = [1, 1, 1]} : vector<1x8x32xf32> to vector<1x8x8xf32>
    %23 = vector.extract_strided_slice %19 {offsets = [0, 0, 0], sizes = [1, 8, 8], strides = [1, 1, 1]} : vector<1x8x32xf32> to vector<1x8x8xf32>
    "tpu.trace_start"() <{level = 10 : i32, message = "bqd,bkd->bqk"}> : () -> ()
    %cst_15 = arith.constant dense<0.000000e+00> : vector<1x8x8xf32>
    %24 = tpu.matmul %21, %22, %cst_15 {dimension_numbers = #tpu.dot_dimension_numbers<[2], [2], [1], [1], [0, 0, 0, 1, 1, 1], [0], [0]>} : vector<1x8x8xf32>, vector<1x8x8xf32>, vector<1x8x8xf32> -> vector<1x8x8xf32>
    "tpu.trace_stop"() : () -> ()
    %cst_16 = arith.constant dense<0xFF800000> : vector<1x8xf32>
    %25 = vector.multi_reduction <maximumf>, %24, %cst_16 [2] : vector<1x8x8xf32> to vector<1x8xf32>
    %26 = vector.shape_cast %25 : vector<1x8xf32> to vector<1x8x1xf32>
    %27 = vector.broadcast %26 : vector<1x8x1xf32> to vector<1x8x8xf32>
    %28 = arith.subf %24, %27 : vector<1x8x8xf32>
    %29 = math.exp %28 : vector<1x8x8xf32>
    %cst_17 = arith.constant dense<0.000000e+00> : vector<1x8xf32>
    %30 = vector.multi_reduction <add>, %29, %cst_17 [2] : vector<1x8x8xf32> to vector<1x8xf32>
    %31 = vector.shape_cast %30 : vector<1x8xf32> to vector<1x8x1xf32>
    %32 = tpu.reciprocal %31 : vector<1x8x1xf32> -> vector<1x8x1xf32>
    %33 = vector.broadcast %32 : vector<1x8x1xf32> to vector<1x8x8xf32>
    %34 = arith.mulf %29, %33 : vector<1x8x8xf32>
    "tpu.trace_start"() <{level = 10 : i32, message = "bqk,bkd->bqd"}> : () -> ()
    %cst_18 = arith.constant dense<0.000000e+00> : vector<1x8x8xf32>
    %35 = tpu.matmul %34, %23, %cst_18 {dimension_numbers = #tpu.dot_dimension_numbers<[2], [1], [1], [2], [0, 0, 0, 1, 1, 2], [0], [0]>} : vector<1x8x8xf32>, vector<1x8x8xf32>, vector<1x8x8xf32> -> vector<1x8x8xf32>
    "tpu.trace_stop"() : () -> ()
    %36 = vector.shape_cast %35 : vector<1x8x8xf32> to vector<8x8xf32>
    %c0_19 = arith.constant 0 : index
    %c0_20 = arith.constant 0 : index
    %37 = vector.load %arg7[%c0_19, %c0_20] : memref<32x32xf32, #tpu.memory_space<vmem>>, vector<8x32xf32>
    %cst_21 = arith.constant dense<0.000000e+00> : vector<8x32xf32>
    %38 = tpu.matmul %36, %37, %cst_21 {dimension_numbers = #tpu.dot_dimension_numbers<[1], [0], [0], [1], [0, 0, 1, 1], [], []>} : vector<8x8xf32>, vector<8x32xf32>, vector<8x32xf32> -> vector<8x32xf32>
    %39 = arith.addf %20, %38 : vector<8x32xf32>
    %40 = vector.extract_strided_slice %16 {offsets = [0, 0, 8], sizes = [1, 8, 8], strides = [1, 1, 1]} : vector<1x8x32xf32> to vector<1x8x8xf32>
    %41 = vector.extract_strided_slice %18 {offsets = [0, 0, 8], sizes = [1, 8, 8], strides = [1, 1, 1]} : vector<1x8x32xf32> to vector<1x8x8xf32>
    %42 = vector.extract_strided_slice %19 {offsets = [0, 0, 8], sizes = [1, 8, 8], strides = [1, 1, 1]} : vector<1x8x32xf32> to vector<1x8x8xf32>
    "tpu.trace_start"() <{level = 10 : i32, message = "bqd,bkd->bqk"}> : () -> ()
    %cst_22 = arith.constant dense<0.000000e+00> : vector<1x8x8xf32>
    %43 = tpu.matmul %40, %41, %cst_22 {dimension_numbers = #tpu.dot_dimension_numbers<[2], [2], [1], [1], [0, 0, 0, 1, 1, 1], [0], [0]>} : vector<1x8x8xf32>, vector<1x8x8xf32>, vector<1x8x8xf32> -> vector<1x8x8xf32>
    "tpu.trace_stop"() : () -> ()
    %cst_23 = arith.constant dense<0xFF800000> : vector<1x8xf32>
    %44 = vector.multi_reduction <maximumf>, %43, %cst_23 [2] : vector<1x8x8xf32> to vector<1x8xf32>
    %45 = vector.shape_cast %44 : vector<1x8xf32> to vector<1x8x1xf32>
    %46 = vector.broadcast %45 : vector<1x8x1xf32> to vector<1x8x8xf32>
    %47 = arith.subf %43, %46 : vector<1x8x8xf32>
    %48 = math.exp %47 : vector<1x8x8xf32>
    %cst_24 = arith.constant dense<0.000000e+00> : vector<1x8xf32>
    %49 = vector.multi_reduction <add>, %48, %cst_24 [2] : vector<1x8x8xf32> to vector<1x8xf32>
    %50 = vector.shape_cast %49 : vector<1x8xf32> to vector<1x8x1xf32>
    %51 = tpu.reciprocal %50 : vector<1x8x1xf32> -> vector<1x8x1xf32>
    %52 = vector.broadcast %51 : vector<1x8x1xf32> to vector<1x8x8xf32>
    %53 = arith.mulf %48, %52 : vector<1x8x8xf32>
    "tpu.trace_start"() <{level = 10 : i32, message = "bqk,bkd->bqd"}> : () -> ()
    %cst_25 = arith.constant dense<0.000000e+00> : vector<1x8x8xf32>
    %54 = tpu.matmul %53, %42, %cst_25 {dimension_numbers = #tpu.dot_dimension_numbers<[2], [1], [1], [2], [0, 0, 0, 1, 1, 2], [0], [0]>} : vector<1x8x8xf32>, vector<1x8x8xf32>, vector<1x8x8xf32> -> vector<1x8x8xf32>
    "tpu.trace_stop"() : () -> ()
    %55 = vector.shape_cast %54 : vector<1x8x8xf32> to vector<8x8xf32>
    %c8 = arith.constant 8 : index
    %c0_26 = arith.constant 0 : index
    %56 = vector.load %arg7[%c8, %c0_26] : memref<32x32xf32, #tpu.memory_space<vmem>>, vector<8x32xf32>
    %cst_27 = arith.constant dense<0.000000e+00> : vector<8x32xf32>
    %57 = tpu.matmul %55, %56, %cst_27 {dimension_numbers = #tpu.dot_dimension_numbers<[1], [0], [0], [1], [0, 0, 1, 1], [], []>} : vector<8x8xf32>, vector<8x32xf32>, vector<8x32xf32> -> vector<8x32xf32>
    %58 = arith.addf %39, %57 : vector<8x32xf32>
    %59 = vector.extract_strided_slice %16 {offsets = [0, 0, 16], sizes = [1, 8, 8], strides = [1, 1, 1]} : vector<1x8x32xf32> to vector<1x8x8xf32>
    %60 = vector.extract_strided_slice %18 {offsets = [0, 0, 16], sizes = [1, 8, 8], strides = [1, 1, 1]} : vector<1x8x32xf32> to vector<1x8x8xf32>
    %61 = vector.extract_strided_slice %19 {offsets = [0, 0, 16], sizes = [1, 8, 8], strides = [1, 1, 1]} : vector<1x8x32xf32> to vector<1x8x8xf32>
    "tpu.trace_start"() <{level = 10 : i32, message = "bqd,bkd->bqk"}> : () -> ()
    %cst_28 = arith.constant dense<0.000000e+00> : vector<1x8x8xf32>
    %62 = tpu.matmul %59, %60, %cst_28 {dimension_numbers = #tpu.dot_dimension_numbers<[2], [2], [1], [1], [0, 0, 0, 1, 1, 1], [0], [0]>} : vector<1x8x8xf32>, vector<1x8x8xf32>, vector<1x8x8xf32> -> vector<1x8x8xf32>
    "tpu.trace_stop"() : () -> ()
    %cst_29 = arith.constant dense<0xFF800000> : vector<1x8xf32>
    %63 = vector.multi_reduction <maximumf>, %62, %cst_29 [2] : vector<1x8x8xf32> to vector<1x8xf32>
    %64 = vector.shape_cast %63 : vector<1x8xf32> to vector<1x8x1xf32>
    %65 = vector.broadcast %64 : vector<1x8x1xf32> to vector<1x8x8xf32>
    %66 = arith.subf %62, %65 : vector<1x8x8xf32>
    %67 = math.exp %66 : vector<1x8x8xf32>
    %cst_30 = arith.constant dense<0.000000e+00> : vector<1x8xf32>
    %68 = vector.multi_reduction <add>, %67, %cst_30 [2] : vector<1x8x8xf32> to vector<1x8xf32>
    %69 = vector.shape_cast %68 : vector<1x8xf32> to vector<1x8x1xf32>
    %70 = tpu.reciprocal %69 : vector<1x8x1xf32> -> vector<1x8x1xf32>
    %71 = vector.broadcast %70 : vector<1x8x1xf32> to vector<1x8x8xf32>
    %72 = arith.mulf %67, %71 : vector<1x8x8xf32>
    "tpu.trace_start"() <{level = 10 : i32, message = "bqk,bkd->bqd"}> : () -> ()
    %cst_31 = arith.constant dense<0.000000e+00> : vector<1x8x8xf32>
    %73 = tpu.matmul %72, %61, %cst_31 {dimension_numbers = #tpu.dot_dimension_numbers<[2], [1], [1], [2], [0, 0, 0, 1, 1, 2], [0], [0]>} : vector<1x8x8xf32>, vector<1x8x8xf32>, vector<1x8x8xf32> -> vector<1x8x8xf32>
    "tpu.trace_stop"() : () -> ()
    %74 = vector.shape_cast %73 : vector<1x8x8xf32> to vector<8x8xf32>
    %c16 = arith.constant 16 : index
    %c0_32 = arith.constant 0 : index
    %75 = vector.load %arg7[%c16, %c0_32] : memref<32x32xf32, #tpu.memory_space<vmem>>, vector<8x32xf32>
    %cst_33 = arith.constant dense<0.000000e+00> : vector<8x32xf32>
    %76 = tpu.matmul %74, %75, %cst_33 {dimension_numbers = #tpu.dot_dimension_numbers<[1], [0], [0], [1], [0, 0, 1, 1], [], []>} : vector<8x8xf32>, vector<8x32xf32>, vector<8x32xf32> -> vector<8x32xf32>
    %77 = arith.addf %58, %76 : vector<8x32xf32>
    %78 = vector.extract_strided_slice %16 {offsets = [0, 0, 24], sizes = [1, 8, 8], strides = [1, 1, 1]} : vector<1x8x32xf32> to vector<1x8x8xf32>
    %79 = vector.extract_strided_slice %18 {offsets = [0, 0, 24], sizes = [1, 8, 8], strides = [1, 1, 1]} : vector<1x8x32xf32> to vector<1x8x8xf32>
    %80 = vector.extract_strided_slice %19 {offsets = [0, 0, 24], sizes = [1, 8, 8], strides = [1, 1, 1]} : vector<1x8x32xf32> to vector<1x8x8xf32>
    "tpu.trace_start"() <{level = 10 : i32, message = "bqd,bkd->bqk"}> : () -> ()
    %cst_34 = arith.constant dense<0.000000e+00> : vector<1x8x8xf32>
    %81 = tpu.matmul %78, %79, %cst_34 {dimension_numbers = #tpu.dot_dimension_numbers<[2], [2], [1], [1], [0, 0, 0, 1, 1, 1], [0], [0]>} : vector<1x8x8xf32>, vector<1x8x8xf32>, vector<1x8x8xf32> -> vector<1x8x8xf32>
    "tpu.trace_stop"() : () -> ()
    %cst_35 = arith.constant dense<0xFF800000> : vector<1x8xf32>
    %82 = vector.multi_reduction <maximumf>, %81, %cst_35 [2] : vector<1x8x8xf32> to vector<1x8xf32>
    %83 = vector.shape_cast %82 : vector<1x8xf32> to vector<1x8x1xf32>
    %84 = vector.broadcast %83 : vector<1x8x1xf32> to vector<1x8x8xf32>
    %85 = arith.subf %81, %84 : vector<1x8x8xf32>
    %86 = math.exp %85 : vector<1x8x8xf32>
    %cst_36 = arith.constant dense<0.000000e+00> : vector<1x8xf32>
    %87 = vector.multi_reduction <add>, %86, %cst_36 [2] : vector<1x8x8xf32> to vector<1x8xf32>
    %88 = vector.shape_cast %87 : vector<1x8xf32> to vector<1x8x1xf32>
    %89 = tpu.reciprocal %88 : vector<1x8x1xf32> -> vector<1x8x1xf32>
    %90 = vector.broadcast %89 : vector<1x8x1xf32> to vector<1x8x8xf32>
    %91 = arith.mulf %86, %90 : vector<1x8x8xf32>
    "tpu.trace_start"() <{level = 10 : i32, message = "bqk,bkd->bqd"}> : () -> ()
    %cst_37 = arith.constant dense<0.000000e+00> : vector<1x8x8xf32>
    %92 = tpu.matmul %91, %80, %cst_37 {dimension_numbers = #tpu.dot_dimension_numbers<[2], [1], [1], [2], [0, 0, 0, 1, 1, 2], [0], [0]>} : vector<1x8x8xf32>, vector<1x8x8xf32>, vector<1x8x8xf32> -> vector<1x8x8xf32>
    "tpu.trace_stop"() : () -> ()
    %93 = vector.shape_cast %92 : vector<1x8x8xf32> to vector<8x8xf32>
    %c24 = arith.constant 24 : index
    %c0_38 = arith.constant 0 : index
    %94 = vector.load %arg7[%c24, %c0_38] : memref<32x32xf32, #tpu.memory_space<vmem>>, vector<8x32xf32>
    %cst_39 = arith.constant dense<0.000000e+00> : vector<8x32xf32>
    %95 = tpu.matmul %93, %94, %cst_39 {dimension_numbers = #tpu.dot_dimension_numbers<[1], [0], [0], [1], [0, 0, 1, 1], [], []>} : vector<8x8xf32>, vector<8x32xf32>, vector<8x32xf32> -> vector<8x32xf32>
    %96 = arith.addf %77, %95 : vector<8x32xf32>
    %c0_40 = arith.constant 0 : index
    %c0_41 = arith.constant 0 : index
    %97 = vector.load %arg8[%c0_40, %c0_41] : memref<1x32xf32, #tpu.memory_space<vmem>>, vector<1x32xf32>
    %98 = vector.broadcast %97 : vector<1x32xf32> to vector<8x32xf32>
    %99 = arith.addf %96, %98 : vector<8x32xf32>
    %100 = arith.addf %3, %99 : vector<8x32xf32>
    %cst_42 = arith.constant dense<0.000000e+00> : vector<8xf32>
    %101 = vector.multi_reduction <add>, %100, %cst_42 [1] : vector<8x32xf32> to vector<8xf32>
    %102 = vector.shape_cast %101 : vector<8xf32> to vector<8x1xf32>
    %cst_43 = arith.constant 3.200000e+01 : f32
    %103 = vector.broadcast %cst_43 : f32 to vector<8x1xf32>
    %104 = arith.divf %102, %103 : vector<8x1xf32>
    %105 = vector.broadcast %104 : vector<8x1xf32> to vector<8x32xf32>
    %106 = arith.subf %100, %105 : vector<8x32xf32>
    %107 = arith.mulf %106, %106 : vector<8x32xf32>
    %cst_44 = arith.constant dense<0.000000e+00> : vector<8xf32>
    %108 = vector.multi_reduction <add>, %107, %cst_44 [1] : vector<8x32xf32> to vector<8xf32>
    %109 = vector.shape_cast %108 : vector<8xf32> to vector<8x1xf32>
    %cst_45 = arith.constant 3.200000e+01 : f32
    %110 = vector.broadcast %cst_45 : f32 to vector<8x1xf32>
    %111 = arith.divf %109, %110 : vector<8x1xf32>
    %112 = vector.broadcast %104 : vector<8x1xf32> to vector<8x32xf32>
    %113 = arith.subf %100, %112 : vector<8x32xf32>
    %cst_46 = arith.constant 9.99999974E-6 : f32
    %114 = vector.broadcast %cst_46 : f32 to vector<8x1xf32>
    %115 = arith.addf %111, %114 : vector<8x1xf32>
    %116 = math.rsqrt %115 : vector<8x1xf32>
    %117 = vector.broadcast %116 : vector<8x1xf32> to vector<8x32xf32>
    %118 = arith.mulf %113, %117 : vector<8x32xf32>
    %c0_47 = arith.constant 0 : index
    %c0_48 = arith.constant 0 : index
    %119 = vector.load %arg9[%c0_47, %c0_48] : memref<1x32xf32, #tpu.memory_space<vmem>>, vector<1x32xf32>
    %120 = vector.broadcast %119 : vector<1x32xf32> to vector<8x32xf32>
    %121 = arith.mulf %118, %120 : vector<8x32xf32>
    %c0_49 = arith.constant 0 : index
    %c0_50 = arith.constant 0 : index
    %122 = vector.load %arg10[%c0_49, %c0_50] : memref<1x32xf32, #tpu.memory_space<vmem>>, vector<1x32xf32>
    %123 = vector.broadcast %122 : vector<1x32xf32> to vector<8x32xf32>
    %124 = arith.addf %121, %123 : vector<8x32xf32>
    %125 = vector.shape_cast %124 : vector<8x32xf32> to vector<1x8x32xf32>
    %c0_51 = arith.constant 0 : index
    %c0_52 = arith.constant 0 : index
    %c0_53 = arith.constant 0 : index
    %126 = vector.load %arg11[%c0_51, %c0_52, %c0_53] : memref<1x8x32xf32, #tpu.memory_space<vmem>>, vector<1x8x32xf32>
    tpu.vector_store %arg11[%c0_51, %c0_52, %c0_53], %125 {strides = array<i32>} : memref<1x8x32xf32, #tpu.memory_space<vmem>>, vector<1x8x32xf32>,
    return
  }
  func.func @transform_0(%arg0: i32) -> (i32, i32, i32) {
    %c0_i32 = arith.constant 0 : i32
    %c0_i32_0 = arith.constant 0 : i32
    %c0_i32_1 = arith.constant 0 : i32
    return %arg0, %c0_i32, %c0_i32_0 : i32, i32, i32
  }
  func.func @transform_1(%arg0: i32) -> (i32, i32, i32) {
    %c0_i32 = arith.constant 0 : i32
    %c0_i32_0 = arith.constant 0 : i32
    %c0_i32_1 = arith.constant 0 : i32
    return %arg0, %c0_i32, %c0_i32_0 : i32, i32, i32
  }
  func.func @transform_2(%arg0: i32) -> (i32, i32) {
    %c0_i32 = arith.constant 0 : i32
    %c0_i32_0 = arith.constant 0 : i32
    %c0_i32_1 = arith.constant 0 : i32
    return %c0_i32, %c0_i32_0 : i32, i32
  }
  func.func @transform_3(%arg0: i32) -> (i32, i32) {
    %c0_i32 = arith.constant 0 : i32
    %c0_i32_0 = arith.constant 0 : i32
    %c0_i32_1 = arith.constant 0 : i32
    return %c0_i32, %c0_i32_0 : i32, i32
  }
  func.func @transform_4(%arg0: i32) -> (i32, i32) {
    %c0_i32 = arith.constant 0 : i32
    %c0_i32_0 = arith.constant 0 : i32
    %c0_i32_1 = arith.constant 0 : i32
    return %c0_i32, %c0_i32_0 : i32, i32
  }
  func.func @transform_5(%arg0: i32) -> (i32, i32) {
    %c0_i32 = arith.constant 0 : i32
    %c0_i32_0 = arith.constant 0 : i32
    %c0_i32_1 = arith.constant 0 : i32
    return %c0_i32, %c0_i32_0 : i32, i32
  }
  func.func @transform_6(%arg0: i32) -> (i32, i32) {
    %c0_i32 = arith.constant 0 : i32
    %c0_i32_0 = arith.constant 0 : i32
    %c0_i32_1 = arith.constant 0 : i32
    return %c0_i32, %c0_i32_0 : i32, i32
  }
  func.func @transform_7(%arg0: i32) -> (i32, i32) {
    %c0_i32 = arith.constant 0 : i32
    %c0_i32_0 = arith.constant 0 : i32
    %c0_i32_1 = arith.constant 0 : i32
    return %c0_i32, %c0_i32_0 : i32, i32
  }
  func.func @transform_8(%arg0: i32) -> (i32, i32) {
    %c0_i32 = arith.constant 0 : i32
    %c0_i32_0 = arith.constant 0 : i32
    %c0_i32_1 = arith.constant 0 : i32
    return %c0_i32, %c0_i32_0 : i32, i32
  }
  func.func @transform_9(%arg0: i32) -> (i32, i32) {
    %c0_i32 = arith.constant 0 : i32
    %c0_i32_0 = arith.constant 0 : i32
    %c0_i32_1 = arith.constant 0 : i32
    return %c0_i32, %c0_i32_0 : i32, i32
  }
  func.func @transform_10(%arg0: i32) -> (i32, i32, i32) {
    %c0_i32 = arith.constant 0 : i32
    %c0_i32_0 = arith.constant 0 : i32
    %c0_i32_1 = arith.constant 0 : i32
    return %arg0, %c0_i32, %c0_i32_0 : i32, i32, i32
  }
}

</mosaic_0001>

<bundles_post_ra>
// kernel: tpu_custom_call.1
= control target key start
LH: loop header
LB: loop body
LE: loop exit
PB: predicated region body
PF: predicated region fallthrough
CT: control target
= control target key end

     0   :  { %s1834_s0 = inlined_call_operand.hbm [shape: f32[2,8,32], index: 0, kind: input, shape index: {}]   ;;  %s1835_s1 = inlined_call_operand.hbm [shape: f32[2,8,32], index: 1, kind: input, shape index: {}]   ;;  %s1836_s2 = inlined_call_operand.hbm [shape: f32[32,64], index: 2, kind: input, shape index: {}]   ;;  %s1837_s3 = inlined_call_operand.vmem [shape: f32[1,64], index: 3, kind: input, shape index: {}]   ;;  %s1838_s4 = inlined_call_operand.hbm [shape: f32[32,32], index: 4, kind: input, shape index: {}]   ;;  %s1839_s5 = inlined_call_operand.vmem [shape: f32[1,32], index: 5, kind: input, shape index: {}]   ;;  %s1840_s6 = inlined_call_operand.hbm [shape: f32[32,32], index: 6, kind: input, shape index: {}]   ;;  %s1841_s7 = inlined_call_operand.vmem [shape: f32[1,32], index: 7, kind: input, shape index: {}]   ;;  %s1842_s8 = inlined_call_operand.vmem [shape: f32[1,32], index: 8, kind: input, shape index: {}]   ;;  %s1843_s9 = inlined_call_operand.vmem [shape: f32[1,32], index: 9, kind: input, shape index: {}]   ;;  %s1844_s10 = inlined_call_operand.hbm [shape: f32[2,8,32], index: 10, kind: output, shape index: {}]  }
   0x1   :  { %1851 = sst [smem:[#allocation23_spill]] %s1836_s2 }
   0x2   :  { %1852 = sst [smem:[#allocation24_spill]] %s1838_s4 }
   0x3   :  { %1853 = sst [smem:[#allocation25_spill]] %s1840_s6 }
   0x4   :  { %15 = vsyncpa [#allocation3], 0 }
   0x5   :  { %17 = vsyncpa [#allocation3 + $0x1], 0 }
   0x6   :  { %18 = vsyncpa [#allocation6], 0 }
   0x7   :  { %20 = vsyncpa [#allocation6 + $0x1], 0 }
   0x8   :  { %21 = vsyncpa [#allocation9], 0 }
   0x9   :  { %22 = vsyncpa [#allocation4], 0 }
   0xa   :  { %24 = vsyncpa [#allocation4 + $0x1], 0  ;;  %s1576_s13 = smov 0   ;;  %s1578_s14 = smov 0  }
   0xb   :  { %s1580_s15 = smov 0   ;;  %s1582_s16 = smov 0  }
   0xc LB: > { %1854 = sst [smem:[#allocation17_spill]] %s1494_s13  ;;  %s1600_s20 = sadd.s32 4294967295, %s1506_s16   ;;  %s1506_s16 = sphi %s1582_s16, %s1874_s16   ;;  %s1502_s15 = sphi %s1580_s15, %s1876_s15   ;;  %s1498_s14 = sphi %s1578_s14, %s1878_s14   ;;  %s1494_s13 = sphi %s1576_s13, %s1877_s13  }
   0xd   : > { %1855 = sst [smem:[#allocation18_spill]] %s1502_s15  ;;  %p1123_p0 = scmp.ge.s32.totalorder %s1506_s16, 1 }
   0xe   : > { %1856 = sst [smem:[#allocation19_spill]] %s1506_s16  ;;  %p51_p1 = scmp.eq.s32.totalorder %s1600_s20, 0 }
   0xf   : > { %s1857_s2 = sld [smem:[#allocation23_spill]]  ;;  %p281_p2 = scmp.lt.s32.totalorder %s1506_s16, 3 }
  0x10   : > { %s1508_s22 = smov [#allocation7]   ;;  %s1859_s4 = sld [smem:[#allocation24_spill]] }
  0x11   : > { %p1605_p3 = pnand %p1123_p0, %p281_p2  ;;  %s294_s23 = sshll.u32 %s1508_s22, 4  ;;  %s295_s23 = int_to_ptr.vmem [resolvable:$true] %s294_s23 }
  0x12   : > { %s1861_s6 = sld [smem:[#allocation25_spill]]  ;;  %s1509_s11 = smov [#allocation8]  }
  0x13   : > { %p1179_p4 = pneg %p1605_p3  ;;  %s311_s12 = sshll.u32 %s1509_s11, 4  ;;  %s312_s12 = int_to_ptr.vmem [resolvable:$true] %s311_s12 }
  0x14   : > { %s1510_s17 = smov 128   ;;  %s1511_s18 = smov 8  }
  0x15   : > { %s292_s19 = sshll.u32 %s1857_s2, 4  ;;  %p1617_p6 = pnand %p1179_p4, %p51_p1  ;;  %s293_s19 = int_to_ptr.hbm [resolvable:$true] %s292_s19 }
  0x16   : > { %s309_s26 = sshll.u32 %s1859_s4, 4  ;;  %s1512_s22 = smov [#allocation10]   ;;  %s310_s26 = int_to_ptr.hbm [resolvable:$true] %s309_s26 }
  0x17   : > { %1182 = dma.hbm_to_vmem [thread:$0]  (!%p1617_p6), %s293_s19, 512, %s295_s23, [#allocation6], %s1510_s17, %s1510_s17, %s1511_s18  }
  0x18   : > { %s326_s30 = sshll.u32 %s1861_s6, 4  ;;  %s328_s24 = sshll.u32 %s1512_s22, 4  ;;  %s327_s30 = int_to_ptr.hbm [resolvable:$true] %s326_s30  ;;  %s329_s24 = int_to_ptr.vmem [resolvable:$true] %s328_s24 }
  0x19   : > { %1185 = dma.hbm_to_vmem [thread:$0]  (!%p1617_p6), %s310_s26, 512, %s312_s12, [#allocation9], %s1510_s17, %s1510_s17, %s1511_s18  }
  0x1a   : > { %1188 = dma.hbm_to_vmem [thread:$0]  (!%p1617_p6), %s327_s30, 512, %s329_s24, [#allocation9], %s1510_s17, %s1510_s17, %s1511_s18  }
  0x1b   : > { %s1122_s25 = sadd.s32 4294967294, %s1506_s16   ;;  %s1632_s28 = sadd.s32 1, %s1506_s16  }
  0x1c   : > { %1862 = sst [smem:[#allocation20_spill]] %s1632_s28  ;;  %s37_s29 = sadd.s32 1, %s1502_s15 }
  0x1d   : > { %s34_s19 = ssub.s32 %s1506_s16, %s1632_s28  ;;  %p44_p7 = scmp.ne.s32.totalorder %s1502_s15, %s1498_s14 }
  0x1e   : > { %p35_p8 = scmp.eq.s32.totalorder %s34_s19, 0  ;;  %p45_p9 = scmp.eq.s32.totalorder %s1506_s16, 0 }
  0x1f   : > { %p50_p10 = scmp.ne.s32.totalorder %s1498_s14, %s1494_s13  ;;  %p268_p11 = scmp.eq.s32.totalorder %s1600_s20, 1 }
  0x20   : > { %s1644_s23 = scalar_select %p35_p8, %s1502_s15, %s37_s29  }
  0x21   : > { %p1646_p12 = por %p45_p9, %p44_p7  ;;  %p1652_p13 = por %p51_p1, %p50_p10 }
  0x22   : > { %1863 = sst [smem:[#allocation21_spill]] %s1644_s23  ;;  %p1656_p0 = por %p268_p11, %p44_p7 }
  0x23   : > { %p274_p2 = scmp.eq.s32.totalorder %s1122_s25, 1  ;;  %p1203_p4 = scmp.lt.s32.totalorder %s1506_s16, 2 }
  0x24   : > { %s351_s11 = sand.u32 1, %s1502_s15   ;;  %s1129_s18 = sshll.u32 %s1506_s16, 3 }
  0x25   : > { %p1662_p6 = por %p274_p2, %p50_p10  ;;  %s1128_s17 = sshll.u32 %s351_s11, 3 }
  0x26   : > { %s359_s29 = scalar_lea.hbm %s1834_s0, %s1129_s18  ;;  %s355_s2 = scalar_lea.vmem [#allocation2], %s1128_s17 }
  0x27   : > { %s1867_s12 = scalar_select %p1662_p6, 1, 0 }
  0x28   : > { %s361_s19 = sshll.u32 %s359_s29, 4  ;;  %s363_s4 = sshll.u32 %s355_s2, 4  ;;  %s362_s19 = int_to_ptr.hbm [resolvable:$true] %s361_s19  ;;  %s364_s4 = int_to_ptr.vmem [resolvable:$true] %s363_s4 }
  0x29   : > { %1868 = sst [smem:[#allocation22_spill]] %s1867_s12  ;;  %p1672_p7 = pnand %p1203_p4, %p1646_p12 }
  0x2a   : > { %s378_s15 = scalar_lea.hbm %s1835_s1, %s1129_s18  ;;  %s370_s28 = sand.u32 1, %s1506_s16  }
  0x2b   : > { %s352_s12 = scalar_lea.sflag [#allocation3], %s351_s11  ;;  %s1368_s22 = sshra.s32 %s362_s19, 4  ;;  %s1369_s22 = int_to_ptr.hbm [resolvable:$true] %s1368_s22 }
  0x2c   : > { %s1370_s24 = scalar_lea.hbm %s1369_s22, 8  ;;  %p1372_p9 = pneg %p1672_p7 }
  0x2d   : > { %p1371_p8 = scmp.ne.s32.totalorder %s1369_s22, %s1370_s24  ;;  %s1375_s29 = scalar_lea.hbm %s1834_s0, 16 }
  0x2e   : > { %p1376_p12 = scmp.lt.s32.totalorder %s1369_s22, %s1834_s0  ;;  %p1377_p2 = scmp.lt.s32.totalorder %s1375_s29, %s1370_s24 }
  0x2f   : > { %p1373_p10 = pnand %p1372_p9, %p1371_p8 }
  0x30   : > { %p1378_p4 = por %p1377_p2, %p1376_p12 }
  0x31   : > { %p1374_p11 = pneg %p1373_p10 }
  0x33   : > { %p1379_p5 = pnand %p1378_p4, %p1374_p11 }
  0x35   : > { %1382 = shalt.err (!%p1379_p5)
}
  0x36   : > { %1192 = dma.hbm_to_vmem [thread:$0]  (!%p1672_p7), %s362_s19, 128, %s364_s4, %s352_s12  }
  0x37   : > { %s380_s11 = sshll.u32 %s378_s15, 4  ;;  %s374_s18 = scalar_lea.vmem [#allocation5], %s1128_s17  ;;  %s381_s11 = int_to_ptr.hbm [resolvable:$true] %s380_s11 }
  0x38   : > { %s382_s16 = sshll.u32 %s374_s18, 4  ;;  %s371_s13 = scalar_lea.sflag [#allocation6], %s370_s28  ;;  %s383_s16 = int_to_ptr.vmem [resolvable:$true] %s382_s16 }
  0x39   : > { %s1398_s2 = sshra.s32 %s381_s11, 4  ;;  %s1405_s29 = scalar_lea.hbm %s1835_s1, 16  ;;  %s1399_s2 = int_to_ptr.hbm [resolvable:$true] %s1398_s2 }
  0x3a   : > { %s1400_s26 = scalar_lea.hbm %s1399_s2, 8  ;;  %p1406_p5 = scmp.lt.s32.totalorder %s1399_s2, %s1835_s1 }
  0x3b   : > { %p1401_p8 = scmp.ne.s32.totalorder %s1399_s2, %s1400_s26  ;;  %p1407_p11 = scmp.lt.s32.totalorder %s1405_s29, %s1400_s26 }
  0x3d   : > { %p1403_p10 = pnand %p1401_p8, %p1372_p9  ;;  %p1408_p2 = por %p1407_p11, %p1406_p5 }
  0x3f   : > { %p1404_p12 = pneg %p1403_p10 }
  0x41   : > { %p1409_p4 = pnand %p1408_p2, %p1404_p12 }
  0x43   : > { %1412 = shalt.err (!%p1409_p4)
}
  0x44   : > { %1195 = dma.hbm_to_vmem [thread:$0]  (!%p1672_p7), %s381_s11, 128, %s383_s16, %s371_s13  }
  0x45   : > { %391 = sbr.rel (%p1605_p3) target bundleno = 1803 (0x70b), region = 60  ;;  %s1707_s15 = sand.u32 (!%p1605_p3), 1, %s1498_s14  }
  0x46   : > { %s1710_s28 = sshll.u32 (!%p1605_p3), %s1707_s15, 3  ;;  %s394_s12 = scalar_lea.sflag (!%p1605_p3), [#allocation3], %s1707_s15 }
  0x47   : > { %s397_s17 = scalar_lea.vmem (!%p1605_p3), [#allocation2], %s1710_s28 }
  0x4a   : > { %1473 = dma.done.wait (%p1652_p13), %s394_s12, 128  }
  0x4b   : > { %1475 = vsyncadd (%p1652_p13), %s394_s12, 4294967168  ;;  %s403_s13 = sand.u32 1, %s1600_s20   ;;  %s407_s21 = scalar_lea.vmem [#allocation5], %s1710_s28 }
  0x4c   : > { %s404_s16 = scalar_lea.sflag [#allocation6], %s403_s13 }
  0x4d   : > { %1477 = dma.done.wait (%p1652_p13), %s404_s16, 128  }
  0x4e   : > { %1479 = vsyncadd (%p1652_p13), %s404_s16, 4294967168 }
  0x4f   : > { %1481 = dma.done.wait (%p51_p1), [#allocation6], 512  }
  0x50   : > { %1483 = vsyncadd (%p51_p1), [#allocation6], 4294966784 }
  0x51   : > { %1485 = dma.done.wait (%p51_p1), [#allocation9], 1024  }
  0x52   : > { %1487 = vsyncadd (%p51_p1), [#allocation9], 4294966272  ;;  %v471_v0 = vld [vmem:[#allocation7 + $0x18] sm:$0xff]  ;;  %v470_v1 = vld [vmem:[#allocation7 + $0x10] sm:$0xff]  ;;  %vm476_vm0 = vcmask 261120   ;;  %s1513_s25 = smov 120  }
  0x53   : > { %492 = vmatpush.msra.mxu0 %v471_v0  ;;  %v1732_v2 = vld [vmem:[%s397_s17] sm:$0xff]  ;;  %v466_v3 = vld [vmem:[%s407_s21] sm:$0xff]  ;;  %s1514_s23 = smov 96   ;;  %s1515_s11 = smov 80   ;;  %vm534_vm1 = vcmask 64512  }
  0x54   : > { %v469_v4 = vld [vmem:[#allocation7 + $0x8] sm:$0xff]  ;;  %v468_v5 = vld [vmem:[#allocation7] sm:$0xff]  ;;  %v467_v6 = vadd.f32 %v466_v3, %v1732_v2  ;;  %s1516_s18 = smov 72   ;;  %s1517_s2 = smov 112   ;;  %v503_v10 = vld [vmem:[#allocation8 + $0x18] sm:$0xff] }
  0x55   : > { %493 = vmatpush.msra.mxu0 %v470_v1  ;;  %v1253_v7 = vld [vmem:[%s1837_s3] ss:$0 sm:$0xff]  ;;  %s1518_s26 = smov 104   ;;  %v502_v11 = vld [vmem:[#allocation8 + $0x10] sm:$0xff]  ;;  %523 = vmatpush.msra.mxu1 %v503_v10  ;;  %v501_v12 = vld [vmem:[#allocation8 + $0x8] sm:$0xff]  ;;  %s1519_s22 = smov 88  }
  0x56   : > { %v500_v13 = vld [vmem:[#allocation8] sm:$0xff]  ;;  %s1158_s12 = sshll.u32 %s1600_s20, 3  ;;  %s464_s20 = scalar_lea.vmem [#allocation11], %s1710_s28 }
  0x57   : > { %494 = vmatpush.msra.mxu0 %v469_v4  ;;  %524 = vmatpush.msra.mxu1 %v502_v11  ;;  %v606_v14 = vld [vmem:[#allocation10] sm:$0xff]  ;;  %s996_s27 = scalar_lea.hbm %s1844_s10, %s1158_s12  ;;  %s1448_s28 = scalar_lea.hbm %s1844_s10, 16 }
  0x58   : > { %v1254_v26 = vld [vmem:[%s1839_s5] ss:$0 sm:$0xff] }
  0x59   : > { %495 = vmatpush.msra.mxu0 %v468_v5  ;;  %525 = vmatpush.msra.mxu1 %v501_v12 }
  0x5a   : > { %1139 = vmatmul.msk.f32.vlgmr.msra.gmra.mxu0 %vm476_vm0, %v467_v6 }
  0x5b   : > { %526 = vmatpush.msra.mxu1 %v500_v13 }
  0x5c   : > { %1140 = vmatmul.msk.f32.vlgmr.msra.gmra.mxu1 %vm476_vm0, %v1732_v2 }
  0x5d   : > { %728 = vmatpush.msrb.mxu1 %v606_v14 }
  0xd7   : > { %v497_v8 = vpop.f32.mrf.mxu0 }
  0xd8   : > { %v498_v9 = vadd.f32 %v1253_v7, %v497_v8 }
  0xd9   : > { %v528_v27 = vpop.f32.mrf.mxu1 }
  0xda   : > { %607 = vrot.lane.b32.xlu2 %v498_v9, %s1513_s25  ;;  %532 = vrot.lane.b32.xlu0 %v498_v9, %s1514_s23  ;;  %v1752_v28 = vadd.f32 %v1254_v26, %v528_v27  ;;  %s998_s23 = sshll.u32 %s464_s20, 4  ;;  %s999_s23 = int_to_ptr.vmem [resolvable:$true] %s998_s23 }
  0xdc   : > { %601 = vmatpush.msra.mxu3 %v1752_v28 }
  0xe2   : > { %735 = vrot.lane.b32.xlu2 %v498_v9, %s1515_s11  ;;  %s1000_s11 = sshll.u32 %s996_s27, 4  ;;  %s1001_s11 = int_to_ptr.hbm [resolvable:$true] %s1000_s11 }
  0xea   : > { %838 = vrot.lane.b32.xlu2 %v498_v9, %s1516_s18  ;;  %s986_s18 = scalar_lea.sflag [#allocation4], %s1707_s15 }
  0xf2   : > { %733 = vrot.lane.b32.xlu2 %v498_v9, %s1517_s2 }
  0xfa   : > { %836 = vrot.lane.b32.xlu2 %v498_v9, %s1518_s26 }
 0x134   : > { %v608_v15 = vpop.permute.xlu2 %607 }
 0x13c   : > { %v736_v16 = vpop.permute.xlu2 %735 }
 0x144   : > { %v839_v17 = vpop.permute.xlu2 %838 }
 0x145   : > { %1153 = vmatpush.xpose.msk.msra.mxu1 %vm534_vm1, %v839_v17 }
 0x14c   : > { %v533_v18 = vpop.permute.xlu0 %532  ;;  %v734_v42 = vpop.permute.xlu2 %733 }
 0x14d   : > { %1141 = vmatpush.xpose.msk.msra.mxu2 %vm534_vm1, %v533_v18 }
 0x150   : > { %1142 = vmatmul.msk.f32.vlgmr.msra.gmra.mxu2 %vm534_vm1, %v498_v9 }
 0x154   : > { %v837_v44 = vpop.permute.xlu2 %836 }
 0x1d3   : > { %v556_v19 = vpop.f32.mrf.mxu2 }
 0x1d4   : > { %v559_v20 = vsel %vm534_vm1, %v556_v19, -inf }
 0x1d5   : > { %560 = vmax.xlane.f32.xlu0 %v559_v20 }
 0x248   : > { %v561_v21 = vpop.xlane.xlu0 %560 }
 0x249   : > { %v562_v22 = vsub.f32 %v556_v19, %v561_v21  ;;  %v686_v19 = vld [vmem:[#allocation10 + $0x8] sm:$0xff] }
 0x24a   : > { %705 = vmatpush.msrb.mxu0 %v686_v19  ;;  %v1257_v19 = vld [vmem:[%s1843_s9] ss:$0 sm:$0xff] }
 0x24b   : > { %v563_v23 = vmul.f32 1.442695, %v562_v22 }
 0x24d   : > { %1258 = vpow2.f32 %v563_v23 }
 0x253   : > { %v1259_v24 = vpop.eup %1258 }
 0x254   : > { %v565_v25 = vsel %vm534_vm1, %v1259_v24, 0.0 }
 0x255   : > { %566 = vadd.xlane.f32.xlu1 %v565_v25 }
 0x26e   : > { %609 = vrot.lane.b32.xlu1 %v498_v9, %s1519_s22 }
 0x2c8   : > { %v567_v29 = vpop.xlane.xlu1 %566 }
 0x2c9   : > { %1260 = vrcp.f32 %v567_v29  ;;  %v579_v33 = vand.u32 2147483648, %v567_v29  ;;  %v577_v35 = vand.u32 2147483647, %v567_v29  ;;  %vm573_vm3 = vweird.f32 %v567_v29 }
 0x2cb   : > { %v580_v37 = vor.u32 1.1754944e-38, %v579_v33  ;;  %vm578_vm5 = vcmp.eq.f32.partialorder %v577_v35, 8.507059e+37 }
 0x2cf   : > { %v1261_v30 = vpop.eup %1260 }
 0x2d0   : > { %v569_v31 = vmul.f32 %v1261_v30, %v567_v29  ;;  %vm574_vm2 = vweird.f32 %v1261_v30 }
 0x2d1   : > { %vm575_vm4 = vmor %vm573_vm3, %vm574_vm2 }
 0x2d2   : > { %v570_v32 = vsub.f32 1.0, %v569_v31 }
 0x2d4   : > { %v571_v34 = vmul.f32 %v1261_v30, %v570_v32 }
 0x2d6   : > { %v572_v36 = vadd.f32 %v1261_v30, %v571_v34 }
 0x2d8   : > { %v576_v38 = vsel %vm575_vm4, %v1261_v30, %v572_v36 }
 0x2d9   : > { %v581_v39 = vsel %vm578_vm5, %v580_v37, %v576_v38 }
 0x2da   : > { %v582_v40 = vmul.f32 %v1259_v24, %v581_v39 }
 0x2dc   : > { %1143 = vmatmul.msk.f32.vlgmr.msra.gmra.mxu3 %vm534_vm1, %v582_v40 }
 0x2e0   : > { %v610_v41 = vpop.permute.xlu1 %609 }
 0x2e1   : > { %1144 = vmatpush.xpose.msk.msrb.mxu3 %vm534_vm1, %v610_v41 }
 0x2e4   : > { %1145 = vmatmul.msk.f32.vlgmr.msrb.gmra.mxu3 %vm534_vm1, %v608_v15 }
 0x2e5   : > { %1149 = vmatpush.xpose.msk.msra.mxu3 %vm534_vm1, %v736_v16 }
 0x2ec   : > { %1150 = vmatmul.msk.f32.vlgmr.msra.gmra.mxu3 %vm534_vm1, %v734_v42 }
 0x35f   : > { %v603_v43 = vpop.f32.mrf.mxu3 }
 0x360   : > { %1148 = vmatmul.msk.f32.vlgmr.msrb.gmra.mxu1 %vm534_vm1, %v603_v43 }
 0x367   : > { %v632_v45 = vpop.f32.mrf.mxu3 }
 0x368   : > { %1154 = vmatmul.msk.f32.vlgmr.msra.gmra.mxu1 %vm534_vm1, %v837_v44  ;;  %v635_v46 = vsel %vm534_vm1, %v632_v45, -inf  ;;  %v914_v44 = vld [vmem:[#allocation10 + $0x18] sm:$0xff] }
 0x369   : > { %636 = vmax.xlane.f32.xlu1 %v635_v46  ;;  %v811_v46 = vld [vmem:[#allocation10 + $0x10] sm:$0xff] }
 0x36a   : > { %830 = vmatpush.msra.mxu0 %v811_v46 }
 0x36f   : > { %v758_v47 = vpop.f32.mrf.mxu3 }
 0x370   : > { %v761_v48 = vsel %vm534_vm1, %v758_v47, -inf }
 0x371   : > { %762 = vmax.xlane.f32.xlu0 %v761_v48 }
 0x382   : > { %660 = vrot.lane.b32.xlu1 %v1752_v28, %s1513_s25 }
 0x3dc   : > { %v637_v49 = vpop.xlane.xlu1 %636 }
 0x3dd   : > { %v638_v50 = vsub.f32 %v632_v45, %v637_v49  ;;  %v1766_v51 = vpop.f32.mrf.mxu1 }
 0x3df   : > { %v639_v52 = vmul.f32 1.442695, %v638_v50 }
 0x3e1   : > { %1262 = vpow2.f32 %v639_v52 }
 0x3e4   : > { %v763_v53 = vpop.xlane.xlu0 %762 }
 0x3e5   : > { %v764_v54 = vsub.f32 %v758_v47, %v763_v53  ;;  %v861_v55 = vpop.f32.mrf.mxu1 }
 0x3e6   : > { %v864_v56 = vsel %vm534_vm1, %v861_v55, -inf }
 0x3e7   : > { %v1263_v57 = vpop.eup %1262  ;;  %v765_v58 = vmul.f32 1.442695, %v764_v54  ;;  %865 = vmax.xlane.f32.xlu2 %v864_v56  ;;  %v1255_v54 = vld [vmem:[%s1841_s7] ss:$0 sm:$0xff] }
 0x3e8   : > { %v641_v59 = vsel %vm534_vm1, %v1263_v57, 0.0 }
 0x3e9   : > { %1264 = vpow2.f32 %v765_v58  ;;  %642 = vadd.xlane.f32.xlu0 %v641_v59 }
 0x3ef   : > { %v1770_v60 = vpop.eup %1264 }
 0x3f0   : > { %v767_v61 = vsel %vm534_vm1, %v1770_v60, 0.0 }
 0x3f1   : > { %768 = vadd.xlane.f32.xlu0 %v767_v61 }
 0x3f4   : > { %v661_v62 = vpop.permute.xlu1 %660 }
 0x3f5   : > { %681 = vmatpush.msrb.mxu2 %v661_v62 }
 0x3ff   : > { %888 = vrot.lane.b32.xlu2 %v1752_v28, %s1518_s26 }
 0x45a   : > { %v866_v63 = vpop.xlane.xlu2 %865 }
 0x45b   : > { %v867_v0 = vsub.f32 %v861_v55, %v866_v63 }
 0x45c   : > { %v643_v1 = vpop.xlane.xlu0 %642 }
 0x45d   : > { %v868_v3 = vmul.f32 1.442695, %v867_v0  ;;  %1266 = vrcp.f32 %v643_v1  ;;  %v655_v10 = vand.u32 2147483648, %v643_v1  ;;  %v653_v12 = vand.u32 2147483647, %v643_v1 }
 0x45e   : > { %vm649_vm7 = vweird.f32 %v643_v1 }
 0x45f   : > { %1268 = vpow2.f32 %v868_v3  ;;  %v656_v14 = vor.u32 1.1754944e-38, %v655_v10  ;;  %vm654_vm9 = vcmp.eq.f32.partialorder %v653_v12, 8.507059e+37 }
 0x462   : > { %v889_v4 = vpop.permute.xlu2 %888 }
 0x463   : > { %v1267_v5 = vpop.eup %1266  ;;  %909 = vmatpush.msrb.mxu3 %v889_v4 }
 0x464   : > { %v645_v6 = vmul.f32 %v1267_v5, %v643_v1  ;;  %vm650_vm6 = vweird.f32 %v1267_v5  ;;  %v769_v18 = vpop.xlane.xlu0 %768 }
 0x465   : > { %v1269_v7 = vpop.eup %1268  ;;  %vm651_vm8 = vmor %vm649_vm7, %vm650_vm6  ;;  %1270 = vrcp.f32 %v769_v18  ;;  %v781_v29 = vand.u32 2147483648, %v769_v18  ;;  %vm775_vm11 = vweird.f32 %v769_v18  ;;  %v779_v31 = vand.u32 2147483647, %v769_v18 }
 0x466   : > { %v646_v8 = vsub.f32 1.0, %v645_v6  ;;  %v870_v9 = vsel %vm534_vm1, %v1269_v7, 0.0 }
 0x467   : > { %871 = vadd.xlane.f32.xlu0 %v870_v9  ;;  %v782_v35 = vor.u32 1.1754944e-38, %v781_v29  ;;  %vm780_vm15 = vcmp.eq.f32.partialorder %v779_v31, 8.507059e+37 }
 0x468   : > { %v647_v11 = vmul.f32 %v1267_v5, %v646_v8 }
 0x46a   : > { %v648_v13 = vadd.f32 %v1267_v5, %v647_v11 }
 0x46b   : > { %v1271_v20 = vpop.eup %1270 }
 0x46c   : > { %v652_v15 = vsel %vm651_vm8, %v1267_v5, %v648_v13  ;;  %v771_v21 = vmul.f32 %v1271_v20, %v769_v18  ;;  %vm776_vm10 = vweird.f32 %v1271_v20 }
 0x46d   : > { %v657_v16 = vsel %vm654_vm9, %v656_v14, %v652_v15  ;;  %vm777_vm12 = vmor %vm775_vm11, %vm776_vm10 }
 0x46e   : > { %v658_v17 = vmul.f32 %v1263_v57, %v657_v16  ;;  %v772_v23 = vsub.f32 1.0, %v771_v21  ;;  %v1256_v16 = vld [vmem:[%s1842_s8] ss:$0 sm:$0xff] }
 0x470   : > { %1146 = vmatmul.msk.f32.vlgmr.msrb.gmra.mxu2 %vm534_vm1, %v658_v17  ;;  %v773_v24 = vmul.f32 %v1271_v20, %v772_v23 }
 0x472   : > { %v774_v27 = vadd.f32 %v1271_v20, %v773_v24 }
 0x474   : > { %v778_v34 = vsel %vm777_vm12, %v1271_v20, %v774_v27 }
 0x475   : > { %v783_v38 = vsel %vm780_vm15, %v782_v35, %v778_v34 }
 0x476   : > { %v784_v43 = vmul.f32 %v1770_v60, %v783_v38  ;;  %v1520_v60 = vmov 32.0  }
 0x47b   : > { %785 = vrot.lane.b32.xlu0 %v1752_v28, %s1517_s2  ;;  %s1442_s2 = sshra.s32 %s1001_s11, 4  ;;  %s1443_s2 = int_to_ptr.hbm [resolvable:$true] %s1442_s2 }
 0x47c   : > { %s1444_s26 = scalar_lea.hbm %s1443_s2, 8  ;;  %p1449_p7 = scmp.lt.s32.totalorder %s1443_s2, %s1844_s10 }
 0x47d   : > { %p1445_p1 = scmp.ne.s32.totalorder %s1443_s2, %s1444_s26  ;;  %p1450_p9 = scmp.lt.s32.totalorder %s1448_s28, %s1444_s26 }
 0x47f   : > { %p1446_p3 = pnand %p1445_p1, %p1656_p0  ;;  %p1451_p8 = por %p1450_p9, %p1449_p7 }
 0x481   : > { %p1447_p13 = pneg %p1446_p3 }
 0x483   : > { %p1452_p10 = pnand %p1451_p8, %p1447_p13 }
 0x4da   : > { %v872_v22 = vpop.xlane.xlu0 %871 }
 0x4db   : > { %1272 = vrcp.f32 %v872_v22  ;;  %v884_v32 = vand.u32 2147483648, %v872_v22  ;;  %v882_v33 = vand.u32 2147483647, %v872_v22  ;;  %vm878_vm14 = vweird.f32 %v872_v22 }
 0x4dc   : > { %1274 = vrcp.f32 %v1520_v60 }
 0x4dd   : > { %v885_v37 = vor.u32 1.1754944e-38, %v884_v32  ;;  %vm883_vm3 = vcmp.eq.f32.partialorder %v882_v33, 8.507059e+37 }
 0x4e1   : > { %v1273_v25 = vpop.eup %1272 }
 0x4e2   : > { %v874_v26 = vmul.f32 %v1273_v25, %v872_v22  ;;  %vm879_vm13 = vweird.f32 %v1273_v25  ;;  %v1275_v61 = vpop.eup %1274 }
 0x4e3   : > { %vm880_vm2 = vmor %vm878_vm14, %vm879_vm13  ;;  %v949_v62 = vmul.f32 32.0, %v1275_v61 }
 0x4e4   : > { %v875_v30 = vsub.f32 1.0, %v874_v26 }
 0x4e5   : > { %v950_v63 = vsub.f32 1.0, %v949_v62 }
 0x4e6   : > { %v876_v28 = vmul.f32 %v1273_v25, %v875_v30 }
 0x4e7   : > { %v951_v0 = vmul.f32 %v1275_v61, %v950_v63 }
 0x4e8   : > { %v877_v36 = vadd.f32 %v1273_v25, %v876_v28 }
 0x4ea   : > { %v881_v39 = vsel %vm880_vm2, %v1273_v25, %v877_v36 }
 0x4eb   : > { %v886_v40 = vsel %vm883_vm3, %v885_v37, %v881_v39 }
 0x4ec   : > { %v887_v41 = vmul.f32 %v1269_v7, %v886_v40 }
 0x4ed   : > { %v786_v42 = vpop.permute.xlu0 %785 }
 0x4ee   : > { %806 = vmatpush.msra.mxu2 %v786_v42  ;;  %1155 = vmatmul.msk.f32.vlgmr.msrb.gmra.mxu3 %vm534_vm1, %v887_v41 }
 0x4ef   : > { %1151 = vmatmul.msk.f32.vlgmr.msra.gmra.mxu2 %vm534_vm1, %v784_v43 }
 0x4f0   : > { %933 = vmatpush.msrb.mxu2 %v914_v44 }
 0x4f3   : > { %v683_v45 = vpop.f32.mrf.mxu2 }
 0x4f4   : > { %1147 = vmatmul.msk.f32.vlgmr.msrb.gmra.mxu0 %vm534_vm1, %v683_v45 }
 0x571   : > { %v911_v47 = vpop.f32.mrf.mxu3  ;;  %v707_v49 = vpop.f32.mrf.mxu0 }
 0x572   : > { %v808_v48 = vpop.f32.mrf.mxu2  ;;  %1156 = vmatmul.msk.f32.vlgmr.msrb.gmra.mxu2 %vm534_vm1, %v911_v47  ;;  %v731_v52 = vadd.f32 %v1766_v51, %v707_v49  ;;  %v952_v51 = vadd.f32 %v1275_v61, %v951_v0 }
 0x573   : > { %1152 = vmatmul.msk.f32.vlgmr.msra.gmra.mxu0 %vm534_vm1, %v808_v48  ;;  %vm953_vm1 = vweird.f32 %v1275_v61 }
 0x574   : > { %v954_v1 = vsel %vm953_vm1, %v1275_v61, %v952_v51 }
 0x5f0   : > { %v832_v50 = vpop.f32.mrf.mxu0 }
 0x5f1   : > { %v835_v53 = vadd.f32 %v832_v50, %v731_v52 }
 0x5f5   : > { %v935_v55 = vpop.f32.mrf.mxu2 }
 0x5f6   : > { %v938_v56 = vadd.f32 %v935_v55, %v835_v53 }
 0x5f8   : > { %v943_v57 = vadd.f32 %v1255_v54, %v938_v56 }
 0x5fa   : > { %v944_v58 = vadd.f32 %v943_v57, %v1732_v2 }
 0x5fc   : > { %v945_v59 = vsel %vm476_vm0, %v944_v58, 0.0 }
 0x5fd   : > { %946 = vadd.xlane.f32.xlu1 %v945_v59 }
 0x670   : > { %v947_v3 = vpop.xlane.xlu1 %946 }
 0x671   : > { %v955_v4 = vmul.f32 %v954_v1, %v947_v3 }
 0x673   : > { %v956_v5 = vsub.f32 %v944_v58, %v955_v4 }
 0x675   : > { %v957_v6 = vmul.f32 %v956_v5, %v956_v5 }
 0x677   : > { %v958_v7 = vsel %vm476_vm0, %v957_v6, 0.0 }
 0x678   : > { %959 = vadd.xlane.f32.xlu0 %v958_v7 }
 0x6eb   : > { %v960_v2 = vpop.xlane.xlu0 %959 }
 0x6ec   : > { %v961_v8 = vmul.f32 %v960_v2, %v954_v1 }
 0x6ee   : > { %v962_v9 = vadd.f32 1e-05, %v961_v8 }
 0x6f0   : > { %1276 = vrsqrt.f32 %v962_v9  ;;  %vm969_vm5 = vweird.f32 %v962_v9 }
 0x6f6   : > { %v1277_v10 = vpop.eup %1276 }
 0x6f7   : > { %v964_v11 = vmul.f32 %v1277_v10, %v962_v9  ;;  %vm970_vm4 = vweird.f32 %v1277_v10 }
 0x6f8   : > { %vm971_vm6 = vmor %vm969_vm5, %vm970_vm4 }
 0x6f9   : > { %v965_v12 = vmul.f32 %v1277_v10, %v964_v11 }
 0x6fb   : > { %v966_v13 = vmul.f32 0.5, %v965_v12 }
 0x6fd   : > { %v967_v14 = vsub.f32 1.5, %v966_v13 }
 0x6ff   : > { %v968_v15 = vmul.f32 %v1277_v10, %v967_v14 }
 0x701   : > { %v972_v17 = vsel %vm971_vm6, %v1277_v10, %v968_v15 }
 0x702   : > { %v973_v18 = vmul.f32 %v972_v17, %v956_v5 }
 0x704   : > { %v978_v20 = vmul.f32 %v1256_v16, %v973_v18 }
 0x706   : > { %v983_v21 = vadd.f32 %v1257_v19, %v978_v20 }
 0x708   : > { %984 = vst.msk [vmem:[%s464_s20] sm:$0xff] %vm476_vm0, %v983_v21 }
 0x709   : > { %1455 = shalt.err (!%p1452_p10)
}
 0x70a   : > { %1177 = dma.vmem_to_hbm [thread:$0]  (%p1656_p0), %s999_s23, 128, %s1001_s11, %s986_s18  }
 0x70b PF: > { %s1870_s15 = sld [smem:[#allocation17_spill]] }
 0x70c   : > { %s1872_s12 = sld [smem:[#allocation19_spill]] }
 0x711   : > { %s1012_s17 = sand.u32 1, %s1870_s15  }
 0x712   : > { %p1873_p12 = scmp.ge.s32.totalorder %s1872_s12, 2  ;;  %s1013_s13 = scalar_lea.sflag [#allocation4], %s1012_s17 }
 0x714   : > { %p1197_p5 = pnand %p1873_p12, %p1662_p6 }
 0x716   : > { %p1198_p11 = pneg %p1197_p5 }
 0x718   : > { %1489 = dma.done.wait (%p1198_p11), %s1013_s13, 128  }
 0x719   : > { %1491 = vsyncadd (%p1198_p11), %s1013_s13, 4294967168  ;;  %s1874_s16 = sld [smem:[#allocation20_spill]]  ;;  %s1877_s13 = smov %s1498_s14 }
 0x71a   : > { %s1875_s21 = sld [smem:[#allocation18_spill]] }
 0x71b   : > { %s1876_s15 = sld [smem:[#allocation21_spill]] }
 0x71f   : > { %p27_p2 = scmp.ge.s32.totalorder %s1874_s16, 4  }
 0x720   : > { %s1878_s14 = smov %s1875_s21 }
 0x721   :  { %29 = sbr.rel (!%p27_p2) target bundleno = 12 (0xc), region = 130 }
 0x726   :  { %1019 = vsyncpa [#allocation3], 1 }
 0x727   :  { %1021 = vsyncpa [#allocation3 + $0x1], 1 }
 0x728   :  { %1022 = vsyncpa [#allocation6], 1 }
 0x729   :  { %1024 = vsyncpa [#allocation6 + $0x1], 1 }
 0x72a   :  { %1025 = vsyncpa [#allocation9], 1 }
 0x72b   :  { %1026 = vsyncpa [#allocation4], 1 }
 0x72c   :  { %1028 = vsyncpa [#allocation4 + $0x1], 1 }

</bundles_post_ra>
